<compile_context>
chip_gen: v6e
topology: v6e:2x2x1
jax: 0.10.0
libtpu: 0.0.40
codegen_flags: <defaults>
</compile_context>

<pallas_src>
import functools

import jax
import jax.numpy as jnp
from jax.experimental import pallas as pl
from jax.experimental.pallas import tpu as pltpu


def _round_up(x, m):
    return ((x + m - 1) // m) * m


def _vmem_cap_bytes():
    """Physical VMEM capacity; conservative v7x fallback if the query fails."""
    try:
        info = pltpu.get_tpu_info()
        cap = getattr(info, "vmem_capacity_bytes", None)
        if cap:
            return int(cap)
    except Exception:
        pass
    return 64 << 20


def _weighted_softmax_kernel(scores_ref, targets_ref, loss_ref, *, n_rows, tile_r):
    i = pl.program_id(0)

    x = scores_ref[...].astype(jnp.float32)    # (tile_r, C)
    t = targets_ref[...].astype(jnp.float32)   # (tile_r, C)

    # Row validity for the trailing partial tile (garbage rows are neutralized
    # with a select, never with a multiply, so Inf/NaN garbage cannot leak).
    row_ids = i * tile_r + jax.lax.broadcasted_iota(jnp.int32, (tile_r, 1), 0)
    valid = row_ids < n_rows

    # sum(t * log t) per row, with the 0*log(0) := 0 convention.
    t_logt = jnp.where(t > 0.0, t * jnp.log(jnp.where(t > 0.0, t, 1.0)), 0.0)
    sum_t_logt = jnp.sum(t_logt, axis=-1, keepdims=True)       # (tile_r, 1)

    s = jnp.sum(t, axis=-1, keepdims=True)                      # true tar_sum
    s_safe = jnp.where(s == 0.0, jnp.float32(1e-6), s)

    # log_softmax over the class axis.
    m = jnp.max(x, axis=-1, keepdims=True)
    lse = jnp.log(jnp.sum(jnp.exp(x - m), axis=-1, keepdims=True)) + m
    log_p = x - lse
    sum_t_logp = jnp.sum(t * log_p, axis=-1, keepdims=True)     # (tile_r, 1)

    # loss_row = tar_sum * KL(tar || softmax(x))
    #          = sum(t*log t) - s*log(s_safe) - sum(t*log_p)
    # True s (not s_safe) in the middle term => tar_sum==0 rows give exactly 0.
    loss_row = sum_t_logt - s * jnp.log(s_safe) - sum_t_logp

    loss_ref[...] = jnp.where(valid, loss_row, 0.0)


def weighted_softmax_loss(scores, targets, *, max_tile_rows=4096,
                          target_tile_bytes=4 << 20):
    assert scores.ndim == 2 and scores.shape == targets.shape
    n, c = scores.shape

    # VMEM footprint per row (lane dim pads to 128 inside VMEM even though we
    # stream the unpadded array from HBM).
    itemsize = max(jnp.dtype(scores.dtype).itemsize,
                   jnp.dtype(targets.dtype).itemsize)
    c_vmem = _round_up(max(c, 1), 128)
    row_bytes = c_vmem * itemsize

    budget_rows = max(8, target_tile_bytes // row_bytes)
    tile_r = min(max_tile_rows, budget_rows, _round_up(n, 8))
    tile_r = max(8, (tile_r // 8) * 8)

    grid = (pl.cdiv(n, tile_r),)

    # Device-aware VMEM cap with ~25% headroom (v7x has only 64 MiB physical).
    need = 2 * 2 * tile_r * row_bytes + (4 << 20)   # 2 inputs x 2 buffers + slack
    cap = _vmem_cap_bytes()
    vmem_limit = int(min(max(need, 16 << 20), (cap * 3) // 4))

    kernel = functools.partial(_weighted_softmax_kernel, n_rows=n, tile_r=tile_r)

    per_row = pl.pallas_call(
        kernel,
        out_shape=jax.ShapeDtypeStruct((n, 1), jnp.float32),
        grid_spec=pltpu.PrefetchScalarGridSpec(
            num_scalar_prefetch=0,
            grid=grid,
            in_specs=[
                pl.BlockSpec((tile_r, c), lambda i: (i, 0)),   # full-C block: no lane pad
                pl.BlockSpec((tile_r, c), lambda i: (i, 0)),
            ],
            out_specs=pl.BlockSpec((tile_r, 1), lambda i: (i, 0)),
        ),
        compiler_params=pltpu.CompilerParams(
            dimension_semantics=("parallel",),   # independent row tiles -> 2 TCs on v7x
            vmem_limit_bytes=vmem_limit,
        ),
    )(scores, targets)

    return jnp.sum(per_row) / n


def _reference(scores, targets):
    x = scores.astype(jnp.float32)
    t = targets.astype(jnp.float32)
    s = jnp.sum(t, axis=1, keepdims=True)
    s = jnp.where(s == 0.0, jnp.float32(1e-6), s)
    tar = t / s
    log_p = jax.nn.log_softmax(x, axis=1)
    log_tar = jnp.log(jnp.where(tar == 0.0, 1.0, tar))
    kl = jnp.sum(tar * (log_tar - log_p), axis=1, keepdims=True)
    loss = kl * s
    return jnp.sum(loss) / x.shape[0]


if __name__ == "__main__":
    N, C = 16, 40   # batch, num classes (C deliberately not a multiple of 128)
    key = jax.random.PRNGKey(0)
    k1, k2, k3 = jax.random.split(key, 3)

    scores = jax.random.normal(k1, (N, C), dtype=jnp.float32)
    targets = jax.random.uniform(k2, (N, C), dtype=jnp.float32)
    targets = targets * (jax.random.uniform(k3, (N, C)) > 0.4).astype(jnp.float32)
    targets = targets.at[3].set(0.0)   # exercise the tar_sum == 0 masked_fill path

    out = weighted_softmax_loss(scores, targets)
    out = jax.block_until_ready(out)

    ref = _reference(scores, targets)
    assert jnp.allclose(out, ref, rtol=1e-5, atol=1e-5), (out, ref)

    print("KERNEL_OK")
</pallas_src>

<mosaic_0001>
module attributes {stable_mosaic.version = 11 : i64} {
  func.func @_weighted_softmax_kernel(%arg0: i32, %arg1: memref<16x40xf32, #tpu.memory_space<vmem>>, %arg2: memref<16x40xf32, #tpu.memory_space<vmem>>, %arg3: memref<16x1xf32, #tpu.memory_space<vmem>>) attributes {dimension_semantics = [#tpu.dimension_semantics<parallel>], iteration_bounds = array<i64: 1>, scalar_prefetch = 0 : i64, scratch_operands = 0 : i64, tpu.core_type = #tpu.core_type<tc>, window_params = [{transform_indices = @transform_0, window_bounds = array<i64: 16, 40>}, {transform_indices = @transform_1, window_bounds = array<i64: 16, 40>}, {transform_indices = @transform_2, window_bounds = array<i64: 16, 1>}]} {
    %c0 = arith.constant 0 : index
    %c0_0 = arith.constant 0 : index
    %0 = vector.load %arg1[%c0, %c0_0] : memref<16x40xf32, #tpu.memory_space<vmem>>, vector<16x40xf32>
    %c0_1 = arith.constant 0 : index
    %c0_2 = arith.constant 0 : index
    %1 = vector.load %arg2[%c0_1, %c0_2] : memref<16x40xf32, #tpu.memory_space<vmem>>, vector<16x40xf32>
    %c16_i32 = arith.constant 16 : i32
    %2 = arith.muli %arg0, %c16_i32 : i32
    %3 = tpu.iota {dimensions = array<i32: 0>} : vector<16x1xi32>
    %4 = vector.broadcast %2 : i32 to vector<16x1xi32>
    %5 = arith.addi %4, %3 : vector<16x1xi32>
    %c16_i32_3 = arith.constant 16 : i32
    %6 = vector.broadcast %c16_i32_3 : i32 to vector<16x1xi32>
    %7 = arith.cmpi slt, %5, %6 : vector<16x1xi32>
    %cst = arith.constant 0.000000e+00 : f32
    %8 = vector.broadcast %cst : f32 to vector<16x40xf32>
    %9 = arith.cmpf ogt, %1, %8 : vector<16x40xf32>
    %cst_4 = arith.constant 0.000000e+00 : f32
    %10 = vector.broadcast %cst_4 : f32 to vector<16x40xf32>
    %11 = arith.cmpf ogt, %1, %10 : vector<16x40xf32>
    %cst_5 = arith.constant 1.000000e+00 : f32
    %12 = vector.broadcast %cst_5 : f32 to vector<16x40xf32>
    %13 = arith.select %11, %1, %12 : vector<16x40xi1>, vector<16x40xf32>
    %14 = math.log %13 : vector<16x40xf32>
    %15 = arith.mulf %1, %14 : vector<16x40xf32>
    %cst_6 = arith.constant 0.000000e+00 : f32
    %16 = vector.broadcast %cst_6 : f32 to vector<16x40xf32>
    %17 = arith.select %9, %15, %16 : vector<16x40xi1>, vector<16x40xf32>
    %cst_7 = arith.constant dense<0.000000e+00> : vector<16xf32>
    %18 = vector.multi_reduction <add>, %17, %cst_7 [1] : vector<16x40xf32> to vector<16xf32>
    %19 = vector.shape_cast %18 : vector<16xf32> to vector<16x1xf32>
    %cst_8 = arith.constant dense<0.000000e+00> : vector<16xf32>
    %20 = vector.multi_reduction <add>, %1, %cst_8 [1] : vector<16x40xf32> to vector<16xf32>
    %21 = vector.shape_cast %20 : vector<16xf32> to vector<16x1xf32>
    %cst_9 = arith.constant 0.000000e+00 : f32
    %22 = vector.broadcast %cst_9 : f32 to vector<16x1xf32>
    %23 = arith.cmpf oeq, %21, %22 : vector<16x1xf32>
    %cst_10 = arith.constant 9.99999997E-7 : f32
    %24 = vector.broadcast %cst_10 : f32 to vector<16x1xf32>
    %25 = arith.select %23, %24, %21 : vector<16x1xi1>, vector<16x1xf32>
    %cst_11 = arith.constant dense<0xFF800000> : vector<16xf32>
    %26 = vector.multi_reduction <maximumf>, %0, %cst_11 [1] : vector<16x40xf32> to vector<16xf32>
    %27 = vector.shape_cast %26 : vector<16xf32> to vector<16x1xf32>
    %28 = vector.broadcast %27 : vector<16x1xf32> to vector<16x40xf32>
    %29 = arith.subf %0, %28 : vector<16x40xf32>
    %30 = math.exp %29 : vector<16x40xf32>
    %cst_12 = arith.constant dense<0.000000e+00> : vector<16xf32>
    %31 = vector.multi_reduction <add>, %30, %cst_12 [1] : vector<16x40xf32> to vector<16xf32>
    %32 = vector.shape_cast %31 : vector<16xf32> to vector<16x1xf32>
    %33 = math.log %32 : vector<16x1xf32>
    %34 = arith.addf %33, %27 : vector<16x1xf32>
    %35 = vector.broadcast %34 : vector<16x1xf32> to vector<16x40xf32>
    %36 = arith.subf %0, %35 : vector<16x40xf32>
    %37 = arith.mulf %1, %36 : vector<16x40xf32>
    %cst_13 = arith.constant dense<0.000000e+00> : vector<16xf32>
    %38 = vector.multi_reduction <add>, %37, %cst_13 [1] : vector<16x40xf32> to vector<16xf32>
    %39 = vector.shape_cast %38 : vector<16xf32> to vector<16x1xf32>
    %40 = math.log %25 : vector<16x1xf32>
    %41 = arith.mulf %21, %40 : vector<16x1xf32>
    %42 = arith.subf %19, %41 : vector<16x1xf32>
    %43 = arith.subf %42, %39 : vector<16x1xf32>
    %cst_14 = arith.constant 0.000000e+00 : f32
    %44 = vector.broadcast %cst_14 : f32 to vector<16x1xf32>
    %45 = arith.select %7, %43, %44 : vector<16x1xi1>, vector<16x1xf32>
    %c0_15 = arith.constant 0 : index
    %c0_16 = arith.constant 0 : index
    %46 = vector.load %arg3[%c0_15, %c0_16] : memref<16x1xf32, #tpu.memory_space<vmem>>, vector<16x1xf32>
    tpu.vector_store %arg3[%c0_15, %c0_16], %45 {strides = array<i32>} : memref<16x1xf32, #tpu.memory_space<vmem>>, vector<16x1xf32>,
    return
  }
  func.func @transform_0(%arg0: i32) -> (i32, i32) {
    %c0_i32 = arith.constant 0 : i32
    %c0_i32_0 = arith.constant 0 : i32
    return %arg0, %c0_i32 : i32, i32
  }
  func.func @transform_1(%arg0: i32) -> (i32, i32) {
    %c0_i32 = arith.constant 0 : i32
    %c0_i32_0 = arith.constant 0 : i32
    return %arg0, %c0_i32 : i32, i32
  }
  func.func @transform_2(%arg0: i32) -> (i32, i32) {
    %c0_i32 = arith.constant 0 : i32
    %c0_i32_0 = arith.constant 0 : i32
    return %arg0, %c0_i32 : i32, i32
  }
}

</mosaic_0001>

<bundles_post_ra>
// kernel: tpu_custom_call.1
= control target key start
LH: loop header
LB: loop body
LE: loop exit
PB: predicated region body
PF: predicated region fallthrough
CT: control target
= control target key end

     0   :  { %7 = vsyncpa [#allocation3], 0  ;;  %s245_s0 = inlined_call_operand.hbm [shape: f32[16,40], index: 0, kind: input, shape index: {}]   ;;  %s246_s1 = inlined_call_operand.hbm [shape: f32[16,40], index: 1, kind: input, shape index: {}]   ;;  %s247_s2 = inlined_call_operand.vmem [shape: f32[16,1], index: 2, kind: output, shape index: {}]  }
   0x1   :  { %8 = vsyncpa [#allocation5], 0  ;;  %s200_s9 = smov [#allocation2]  }
   0x2   :  { %s14_s10 = sshll.u32 %s200_s9, 4  ;;  %s15_s10 = int_to_ptr.vmem [resolvable:$true] %s14_s10 }
   0x3   :  { %s164_s11 = scalar_lea.vmem %s15_s10, 256  ;;  %p169_p1 = scmp.lt.s32.totalorder %s15_s10, %s15_s10 }
   0x4   :  { %p165_p0 = scmp.ne.s32.totalorder %s15_s10, %s164_s11  ;;  %p170_p2 = scmp.lt.s32.totalorder %s164_s11, %s164_s11 }
   0x6   :  { %p171_p3 = por %p170_p2, %p169_p1 }
   0x8   :  { %p172_p4 = pnand %p171_p3, %p165_p0 }
   0xa   :  { %175 = shalt.err (!%p172_p4)
}
   0xb   :  { %s201_s12 = smov 128   ;;  %s202_s13 = smov 8  }
   0xc   :  { %20 = dma.hbm_to_vmem [thread:$0]  %s245_s0, 256, %s15_s10, [#allocation3], %s201_s12, %s201_s12, %s202_s13  }
   0xd   :  { %s203_s16 = smov [#allocation4]  }
   0xe   :  { %s26_s17 = sshll.u32 %s203_s16, 4  ;;  %s27_s17 = int_to_ptr.vmem [resolvable:$true] %s26_s17 }
   0xf   :  { %s184_s18 = scalar_lea.vmem %s27_s17, 256  ;;  %p189_p6 = scmp.lt.s32.totalorder %s27_s17, %s27_s17 }
  0x10   :  { %p185_p5 = scmp.ne.s32.totalorder %s27_s17, %s184_s18  ;;  %p190_p7 = scmp.lt.s32.totalorder %s184_s18, %s184_s18 }
  0x12   :  { %p191_p8 = por %p190_p7, %p189_p6 }
  0x14   :  { %p192_p9 = pnand %p191_p8, %p185_p5 }
  0x16   :  { %195 = shalt.err (!%p192_p9)
}
  0x17   :  { %32 = dma.hbm_to_vmem [thread:$0]  %s246_s1, 256, %s27_s17, [#allocation5], %s201_s12, %s201_s12, %s202_s13  }
  0x18   :  { %196 = dma.done.wait [#allocation3], 256  }
  0x19   :  { %197 = vsyncadd [#allocation3], 4294967040 }
  0x1a   :  { %198 = dma.done.wait [#allocation5], 256  }
  0x1b   :  { %199 = vsyncadd [#allocation5], 4294967040  ;;  %vm64_vm0 = vcmask 326656   ;;  %v39_v0 = vld [vmem:[#allocation2] sm:$0xff]  ;;  %v40_v1 = vld [vmem:[#allocation2 + $0x8] sm:$0xff]  ;;  %vm127_vm5 = vcmask 7168  }
  0x1c   :  { %v81_v2 = vsel %vm64_vm0, %v39_v0, -inf  ;;  %v84_v3 = vsel %vm64_vm0, %v40_v1, -inf  ;;  %v41_v4 = vld [vmem:[#allocation4] sm:$0xff]  ;;  %v42_v12 = vld [vmem:[#allocation4 + $0x8] sm:$0xff] }
  0x1d   :  { %82 = vmax.xlane.f32.xlu0 %v81_v2  ;;  %v71_v5 = vsel %vm64_vm0, %v41_v4, 0.0  ;;  %vm52_vm1 = vcmp.gt.f32.partialorder %v41_v4, 0.0  ;;  %vm53_vm2 = vcmp.gt.f32.partialorder %v42_v12, 0.0  ;;  %v74_v19 = vsel %vm64_vm0, %v42_v12, 0.0 }
  0x1e   :  { %v54_v13 = vsel %vm52_vm1, %v41_v4, 1.0  ;;  %v55_v14 = vsel %vm53_vm2, %v42_v12, 1.0 }
  0x21   :  { %85 = vmax.xlane.f32.xlu0 %v84_v3 }
  0x25   :  { %72 = vadd.xlane.f32.xlu0 %v71_v5 }
  0xa6   :  { %v83_v6 = vpop.xlane.xlu0 %82 }
  0xa7   :  { %v87_v7 = vsub.f32 %v39_v0, %v83_v6 }
  0xa9   :  { %v89_v8 = vmul.f32 1.442695, %v87_v7 }
  0xaa   :  { %v86_v9 = vpop.xlane.xlu0 %85 }
  0xab   :  { %140 = vpow2.f32 %v89_v8  ;;  %v88_v10 = vsub.f32 %v40_v1, %v86_v9 }
  0xad   :  { %v91_v11 = vmul.f32 1.442695, %v88_v10 }
  0xae   :  { %v73_v44 = vpop.xlane.xlu0 %72 }
  0xaf   :  { %142 = vpow2.f32 %v91_v11  ;;  %vm77_vm3 = vcmp.eq.f32.partialorder %v73_v44, 0.0 }
  0xb0   :  { %144 = vlog2.f32 %v54_v13  ;;  %v79_v46 = vsel %vm77_vm3, 1e-06, %v73_v44 }
  0xb1   :  { %146 = vlog2.f32 %v55_v14 }
  0xb8   :  { %v141_v15 = vpop.eup %140 }
  0xb9   :  { %v93_v16 = vsel %vm64_vm0, %v141_v15, 0.0 }
  0xba   :  { %94 = vadd.xlane.f32.xlu1 %v93_v16 }
  0xbc   :  { %v143_v17 = vpop.eup %142 }
  0xbd   :  { %v96_v18 = vsel %vm64_vm0, %v143_v17, 0.0  ;;  %v145_v20 = vpop.eup %144 }
  0xbe   :  { %97 = vadd.xlane.f32.xlu1 %v96_v18  ;;  %v147_v21 = vpop.eup %146  ;;  %v57_v22 = vmul.f32 0.6931472, %v145_v20 }
  0xbf   :  { %v59_v23 = vmul.f32 0.6931472, %v147_v21 }
  0xc0   :  { %v60_v24 = vmul.f32 %v57_v22, %v41_v4 }
  0xc1   :  { %v61_v25 = vmul.f32 %v59_v23, %v42_v12 }
  0xc2   :  { %75 = vadd.xlane.f32.xlu1 %v74_v19  ;;  %v62_v26 = vsel %vm52_vm1, %v60_v24, 0.0 }
  0xc3   :  { %v65_v27 = vsel %vm64_vm0, %v62_v26, 0.0  ;;  %v63_v28 = vsel %vm53_vm2, %v61_v25, 0.0 }
  0xc4   :  { %66 = vadd.xlane.f32.xlu0 %v65_v27  ;;  %v68_v29 = vsel %vm64_vm0, %v63_v28, 0.0 }
  0xc6   :  { %69 = vadd.xlane.f32.xlu1 %v68_v29 }
 0x143   :  { %v95_v30 = vpop.xlane.xlu1 %94 }
 0x144   :  { %148 = vlog2.f32 %v95_v30 }
 0x147   :  { %v98_v31 = vpop.xlane.xlu1 %97 }
 0x148   :  { %150 = vlog2.f32 %v98_v31 }
 0x149   :  { %152 = vlog2.f32 %v79_v46 }
 0x14b   :  { %v76_v45 = vpop.xlane.xlu1 %75 }
 0x14c   :  { %vm78_vm4 = vcmp.eq.f32.partialorder %v76_v45, 0.0 }
 0x14d   :  { %v80_v47 = vsel %vm78_vm4, 1e-06, %v76_v45  ;;  %v67_v53 = vpop.xlane.xlu0 %66 }
 0x14e   :  { %154 = vlog2.f32 %v80_v47 }
 0x14f   :  { %v70_v56 = vpop.xlane.xlu1 %69 }
 0x151   :  { %v149_v32 = vpop.eup %148 }
 0x152   :  { %v100_v33 = vmul.f32 0.6931472, %v149_v32 }
 0x154   :  { %v103_v34 = vadd.f32 %v100_v33, %v83_v6 }
 0x155   :  { %v151_v35 = vpop.eup %150 }
 0x156   :  { %v102_v36 = vmul.f32 0.6931472, %v151_v35  ;;  %v105_v37 = vsub.f32 %v39_v0, %v103_v34  ;;  %v153_v48 = vpop.eup %152 }
 0x157   :  { %v116_v49 = vmul.f32 0.6931472, %v153_v48 }
 0x158   :  { %v104_v38 = vadd.f32 %v102_v36, %v86_v9  ;;  %v107_v39 = vmul.f32 %v105_v37, %v41_v4 }
 0x159   :  { %v119_v52 = vmul.f32 %v116_v49, %v73_v44 }
 0x15a   :  { %v109_v40 = vsel %vm64_vm0, %v107_v39, 0.0  ;;  %v106_v41 = vsub.f32 %v40_v1, %v104_v38 }
 0x15b   :  { %110 = vadd.xlane.f32.xlu0 %v109_v40  ;;  %v155_v50 = vpop.eup %154  ;;  %v121_v55 = vsub.f32 %v67_v53, %v119_v52 }
 0x15c   :  { %v108_v42 = vmul.f32 %v106_v41, %v42_v12  ;;  %v118_v51 = vmul.f32 0.6931472, %v155_v50 }
 0x15e   :  { %v112_v43 = vsel %vm64_vm0, %v108_v42, 0.0  ;;  %v120_v54 = vmul.f32 %v118_v51, %v76_v45 }
 0x15f   :  { %113 = vadd.xlane.f32.xlu1 %v112_v43 }
 0x160   :  { %v122_v59 = vsub.f32 %v70_v56, %v120_v54 }
 0x1e4   :  { %v111_v57 = vpop.xlane.xlu0 %110 }
 0x1e5   :  { %v123_v58 = vsub.f32 %v121_v55, %v111_v57 }
 0x1e7   :  { %128 = vst.msk [vmem:[%s247_s2] sm:$0xff] %vm127_vm5, %v123_v58 }
 0x1e8   :  { %v114_v60 = vpop.xlane.xlu1 %113 }
 0x1e9   :  { %v124_v61 = vsub.f32 %v122_v59, %v114_v60 }
 0x1eb   :  { %129 = vst.msk [vmem:[%s247_s2 + $0x8] sm:$0xff] %vm127_vm5, %v124_v61 }
 0x1ec   :  { %134 = vsyncpa [#allocation3], 1 }
 0x1ed   :  { %135 = vsyncpa [#allocation5], 1 }

</bundles_post_ra>
